<compile_context>
chip_gen: v5e
topology: v5e:2x2
jax: 0.10.0
libtpu: 0.0.40
codegen_flags: <defaults>
</compile_context>

<pallas_src>
import functools

import numpy as np
import jax
import jax.numpy as jnp
from jax.experimental import pallas as pl
from jax.experimental.pallas import tpu as pltpu

NEG_SLOPE = 0.01  # nn.LeakyReLU() default negative_slope


def _round_up(x, m):
    return (x + m - 1) // m * m


# --------------------------------- kernel ---------------------------------
def _decoder_kernel(x_ref,
                    bcat1_ref, sh1_ref, brow1_ref,
                    bcat2_ref, sh2_ref, brow2_ref,
                    bcat3_ref, sh3_ref, brow3_ref,
                    o_ref, *, slope):
    """Fused 3x (ConvTranspose2d + LeakyReLU) for one stacked batch tile.

    Activations are carried in (B_T*Hin_pad, Cin*Win_pad) layout.  Per layer:
        r     = A @ Bcat                    (one wide MXU matmul, all kh lanes)
        acc   = tree_sum_kh( Sh[kh] @ r[:, kh-block] ) + bias_row
        A_out = LeakyReLU(acc)
    The (B_T*Hout_pad, CWout_pad) result is directly the next layer's A.
    """

    def layer(a, bcat_ref, sh_ref, brow_ref):
        k = sh_ref.shape[0]
        cwp = brow_ref.shape[-1]                        # padded Cout*Wout (128)
        # one wide data matmul: channel mix + column scatter for every kh at once
        r = jnp.dot(a.astype(jnp.bfloat16), bcat_ref[...],
                    preferred_element_type=jnp.float32)          # (M_in, k*cwp)
        r16 = r.astype(jnp.bfloat16)
        # K independent 0/1 row-scatter matmuls (block-diagonal over the batch tile);
        # lane slices are 128-aligned, so they are free vreg selections.
        parts = [jnp.dot(sh_ref[kh], r16[:, kh * cwp:(kh + 1) * cwp],
                         preferred_element_type=jnp.float32)
                 for kh in range(k)]
        # pairwise / tree sum: the K scatter matmuls are independent on the MXU
        while len(parts) > 1:
            nxt = [parts[i] + parts[i + 1] for i in range(0, len(parts) - 1, 2)]
            if len(parts) % 2:
                nxt.append(parts[-1])
            parts = nxt
        acc = parts[0] + brow_ref[...]
        return jnp.where(acc > 0.0, acc, slope * acc)

    a = x_ref[0]                                     # (B_T*H0_pad, C0*W0)
    a = layer(a, bcat1_ref, sh1_ref, brow1_ref)      # (B_T*16, 128)
    a = layer(a, bcat2_ref, sh2_ref, brow2_ref)      # (B_T*32, 128)
    a = layer(a, bcat3_ref, sh3_ref, brow3_ref)      # (B_T*88, 128)
    o_ref[0] = a


# ----------------------------- table preparation ---------------------------
def _prep_layer(w, b, stride, hin, win, hin_pad, cwin_pad, batch_tile):
    """Build bf16 tables for one ConvTranspose2d layer (pure numpy, runs once).

    Returns:
      bcat : (cwin_pad, K*cwout_pad)   weights folded with the 0/1 column scatter,
                                       all K kh-slices concatenated along lanes
      sh   : (K, B_T*hout_pad, B_T*hin_pad)  block-diagonal 0/1 row scatter
      brow : (1, cwout_pad)            bias broadcast row (f32, zero in pad lanes)
    plus (hout, wout, hout_pad, cwout, cwout_pad).
    """
    # TODO(synk): hard-codes padding=0, output_padding=0, dilation=1, square
    # kernels/strides — exactly the configurations used by this Decoder.
    w = np.asarray(w, np.float64)              # (Cin, Cout, K, K)
    b = np.asarray(b, np.float64)
    cin, cout, k, _ = w.shape
    hout = (hin - 1) * stride + k
    wout = (win - 1) * stride + k
    cwout = cout * wout
    cwout_pad = _round_up(cwout, 128)
    hout_pad = _round_up(hout, 8)

    bcat = np.zeros((cwin_pad, k * cwout_pad), np.float64)
    for kh in range(k):
        base = kh * cwout_pad
        for kw in range(k):
            for iw in range(win):
                ow = iw * stride + kw
                rows = np.arange(cin) * win + iw
                cols = base + np.arange(cout) * wout + ow
                bcat[np.ix_(rows, cols)] += w[:, :, kh, kw]

    sh = np.zeros((k, batch_tile * hout_pad, batch_tile * hin_pad), np.float64)
    ih = np.arange(hin)
    for kh in range(k):
        for bt in range(batch_tile):
            sh[kh, bt * hout_pad + ih * stride + kh, bt * hin_pad + ih] = 1.0

    brow = np.zeros((1, cwout_pad), np.float64)
    for co in range(cout):
        brow[0, co * wout:(co + 1) * wout] = b[co]

    return (jnp.asarray(bcat, jnp.bfloat16),
            jnp.asarray(sh, jnp.bfloat16),
            jnp.asarray(brow, jnp.float32),
            hout, wout, hout_pad, cwout, cwout_pad)


# --------------------------------- wrapper ---------------------------------
def build_decoder(params, batch_size, h0, w0, batch_tile=None):
    """Precompute all tables for a fixed (batch_size, h0, w0) and return a
    jitted forward(z) with zero per-call table prep."""
    c0 = int(params["w1"].shape[0])
    cout3 = int(params["w3"].shape[1])

    n = int(batch_size)
    if batch_tile is None:
        # Stack up to 8 elements per grid step, but keep >= 2 grid steps when
        # n >= 2 so a v7x chip can use both TensorCores (grid axis is parallel).
        batch_tile = 1 if n < 2 else min(8, -(-n // 2))
    g = -(-n // batch_tile)              # grid steps
    n_pad = g * batch_tile

    h0_pad = _round_up(h0, 8)
    cw0 = c0 * w0

    (bcat1, sh1, brow1, h1, w1, h1p, cw1, cw1p) = _prep_layer(
        params["w1"], params["b1"], 2, h0, w0, h0_pad, cw0, batch_tile)
    (bcat2, sh2, brow2, h2, w2, h2p, cw2, cw2p) = _prep_layer(
        params["w2"], params["b2"], 3, h1, w1, h1p, cw1p, batch_tile)
    (bcat3, sh3, brow3, h3, w3, h3p, cw3, cw3p) = _prep_layer(
        params["w3"], params["b3"], 3, h2, w2, h2p, cw2p, batch_tile)

    tables = (bcat1, sh1, brow1, bcat2, sh2, brow2, bcat3, sh3, brow3)
    m0 = batch_tile * h0_pad
    m3 = batch_tile * h3p

    call = pl.pallas_call(
        functools.partial(_decoder_kernel, slope=NEG_SLOPE),
        out_shape=jax.ShapeDtypeStruct((g, m3, cw3p), jnp.float32),
        grid=(g,),
        in_specs=[pl.BlockSpec((1, m0, cw0), lambda i: (i, 0, 0))]
                + [pl.BlockSpec(memory_space=pltpu.MemorySpace.VMEM)] * 9,
        out_specs=pl.BlockSpec((1, m3, cw3p), lambda i: (i, 0, 0)),
        compiler_params=pltpu.CompilerParams(
            dimension_semantics=("parallel",)),
    )

    @jax.jit
    def _forward(z, tabs):
        # NCHW -> (N, H, C*W); pad rows to h0_pad and batch to g*batch_tile;
        # stack batch_tile elements along the sublane axis per grid step.
        x = jnp.transpose(z.astype(jnp.float32), (0, 2, 1, 3)).reshape(n, h0, cw0)
        x = jnp.pad(x, ((0, n_pad - n), (0, h0_pad - h0), (0, 0)))
        x = x.reshape(g, m0, cw0)
        out = call(x, *tabs)
        # strip batch / row / lane padding, back to NCHW
        out = out.reshape(n_pad, h3p, cw3p)[:n, :h3, :cw3]
        out = out.reshape(n, h3, cout3, w3)
        return jnp.transpose(out, (0, 2, 1, 3))

    def forward(z):
        assert z.shape == (n, c0, h0, w0), (z.shape, (n, c0, h0, w0))
        return _forward(z, tables)

    return forward


# ------------------- pure-numpy reference (for sanity check) ----------------
def _ref_convt_leaky(x, w, b, stride):
    x = np.asarray(x, np.float64)
    w = np.asarray(w, np.float64)
    b = np.asarray(b, np.float64)
    N, Cin, Hin, Win = x.shape
    _, Cout, K, _ = w.shape
    Hout = (Hin - 1) * stride + K
    Wout = (Win - 1) * stride + K
    out = np.zeros((N, Cout, Hout, Wout), np.float64)
    for nn_ in range(N):
        for co in range(Cout):
            for ci in range(Cin):
                for ih in range(Hin):
                    for iw in range(Win):
                        out[nn_, co, ih * stride:ih * stride + K,
                            iw * stride:iw * stride + K] += x[nn_, ci, ih, iw] * w[ci, co]
            out[nn_, co] += b[co]
    return np.where(out > 0, out, NEG_SLOPE * out).astype(np.float32)


if __name__ == "__main__":
    key = jax.random.PRNGKey(0)
    ks = jax.random.split(key, 8)

    latent_dim = 4
    H0 = W0 = 4

    # deterministic synthetic parameters (shapes from Decoder.__init__)
    params = {
        "w1": 0.2 * jax.random.normal(ks[1], (latent_dim, 4, 3, 3), jnp.float32),
        "b1": 0.1 * jax.random.normal(ks[2], (4,), jnp.float32),
        "w2": 0.2 * jax.random.normal(ks[3], (4, 4, 3, 3), jnp.float32),
        "b2": 0.1 * jax.random.normal(ks[4], (4,), jnp.float32),
        "w3": 0.2 * jax.random.normal(ks[5], (4, 1, 4, 4), jnp.float32),
        "b3": 0.1 * jax.random.normal(ks[6], (1,), jnp.float32),
    }

    def ref_forward(z):
        r = _ref_convt_leaky(z, params["w1"], params["b1"], 2)
        r = _ref_convt_leaky(r, params["w2"], params["b2"], 3)
        return _ref_convt_leaky(r, params["w3"], params["b3"], 3)

    # case 1: N=2  (batch_tile=1, grid=2 — one element per TensorCore on v7x)
    z2 = jax.random.normal(ks[0], (2, latent_dim, H0, W0), jnp.float32)
    fwd2 = build_decoder(params, batch_size=2, h0=H0, w0=W0)
    out2 = jax.block_until_ready(fwd2(z2))
    assert out2.shape == (2, 1, 82, 82), out2.shape
    np.testing.assert_allclose(np.asarray(out2), ref_forward(z2), rtol=2e-2, atol=2e-2)

    # case 2: N=8  (batch_tile=4, grid=2 — exercises the batch-stacked path)
    z8 = jax.random.normal(ks[7], (8, latent_dim, H0, W0), jnp.float32)
    fwd8 = build_decoder(params, batch_size=8, h0=H0, w0=W0)
    out8 = jax.block_until_ready(fwd8(z8))
    assert out8.shape == (8, 1, 82, 82), out8.shape
    np.testing.assert_allclose(np.asarray(out8), ref_forward(z8), rtol=2e-2, atol=2e-2)

    print("KERNEL_OK")
</pallas_src>

<mosaic_0001>
module attributes {stable_mosaic.version = 11 : i64} {
  func.func @_decoder_kernel(%arg0: i32, %arg1: memref<1x8x16xf32, #tpu.memory_space<vmem>>, %arg2: memref<16x384xbf16, #tpu.memory_space<vmem>>, %arg3: memref<3x16x8xbf16, #tpu.memory_space<vmem>>, %arg4: memref<1x128xf32, #tpu.memory_space<vmem>>, %arg5: memref<128x384xbf16, #tpu.memory_space<vmem>>, %arg6: memref<3x32x16xbf16, #tpu.memory_space<vmem>>, %arg7: memref<1x128xf32, #tpu.memory_space<vmem>>, %arg8: memref<128x512xbf16, #tpu.memory_space<vmem>>, %arg9: memref<4x88x32xbf16, #tpu.memory_space<vmem>>, %arg10: memref<1x128xf32, #tpu.memory_space<vmem>>, %arg11: memref<1x88x128xf32, #tpu.memory_space<vmem>>) attributes {dimension_semantics = [#tpu.dimension_semantics<parallel>], iteration_bounds = array<i64: 2>, scalar_prefetch = 0 : i64, scratch_operands = 0 : i64, tpu.core_type = #tpu.core_type<tc>, window_params = [{transform_indices = @transform_0, window_bounds = array<i64: 1, 8, 16>}, {pipeline_mode = #tpu.pipeline_mode<synchronous>, transform_indices = @transform_1, window_bounds = array<i64: 16, 384>}, {pipeline_mode = #tpu.pipeline_mode<synchronous>, transform_indices = @transform_2, window_bounds = array<i64: 3, 16, 8>}, {pipeline_mode = #tpu.pipeline_mode<synchronous>, transform_indices = @transform_3, window_bounds = array<i64: 1, 128>}, {pipeline_mode = #tpu.pipeline_mode<synchronous>, transform_indices = @transform_4, window_bounds = array<i64: 128, 384>}, {pipeline_mode = #tpu.pipeline_mode<synchronous>, transform_indices = @transform_5, window_bounds = array<i64: 3, 32, 16>}, {pipeline_mode = #tpu.pipeline_mode<synchronous>, transform_indices = @transform_6, window_bounds = array<i64: 1, 128>}, {pipeline_mode = #tpu.pipeline_mode<synchronous>, transform_indices = @transform_7, window_bounds = array<i64: 128, 512>}, {pipeline_mode = #tpu.pipeline_mode<synchronous>, transform_indices = @transform_8, window_bounds = array<i64: 4, 88, 32>}, {pipeline_mode = #tpu.pipeline_mode<synchronous>, transform_indices = @transform_9, window_bounds = array<i64: 1, 128>}, {transform_indices = @transform_10, window_bounds = array<i64: 1, 88, 128>}]} {
    %c0 = arith.constant 0 : index
    %c0_0 = arith.constant 0 : index
    %c0_1 = arith.constant 0 : index
    %0 = vector.load %arg1[%c0, %c0_0, %c0_1] : memref<1x8x16xf32, #tpu.memory_space<vmem>>, vector<1x8x16xf32>
    %1 = vector.shape_cast %0 : vector<1x8x16xf32> to vector<8x16xf32>
    %2 = arith.truncf %1 : vector<8x16xf32> to vector<8x16xbf16>
    %c0_2 = arith.constant 0 : index
    %c0_3 = arith.constant 0 : index
    %3 = vector.load %arg2[%c0_2, %c0_3] : memref<16x384xbf16, #tpu.memory_space<vmem>>, vector<16x384xbf16>
    %cst = arith.constant dense<0.000000e+00> : vector<8x384xf32>
    %4 = tpu.matmul %2, %3, %cst {dimension_numbers = #tpu.dot_dimension_numbers<[1], [0], [0], [1], [0, 0, 1, 1], [], []>} : vector<8x16xbf16>, vector<16x384xbf16>, vector<8x384xf32> -> vector<8x384xf32>
    %5 = arith.truncf %4 : vector<8x384xf32> to vector<8x384xbf16>
    %c0_4 = arith.constant 0 : index
    %c0_5 = arith.constant 0 : index
    %c0_6 = arith.constant 0 : index
    %6 = vector.load %arg3[%c0_4, %c0_5, %c0_6] : memref<3x16x8xbf16, #tpu.memory_space<vmem>>, vector<1x16x8xbf16>
    %7 = vector.shape_cast %6 : vector<1x16x8xbf16> to vector<16x8xbf16>
    %8 = vector.extract_strided_slice %5 {offsets = [0, 0], sizes = [8, 128], strides = [1, 1]} : vector<8x384xbf16> to vector<8x128xbf16>
    %cst_7 = arith.constant dense<0.000000e+00> : vector<16x128xf32>
    %9 = tpu.matmul %7, %8, %cst_7 {dimension_numbers = #tpu.dot_dimension_numbers<[1], [0], [0], [1], [0, 0, 1, 1], [], []>} : vector<16x8xbf16>, vector<8x128xbf16>, vector<16x128xf32> -> vector<16x128xf32>
    %c1 = arith.constant 1 : index
    %c0_8 = arith.constant 0 : index
    %c0_9 = arith.constant 0 : index
    %10 = vector.load %arg3[%c1, %c0_8, %c0_9] : memref<3x16x8xbf16, #tpu.memory_space<vmem>>, vector<1x16x8xbf16>
    %11 = vector.shape_cast %10 : vector<1x16x8xbf16> to vector<16x8xbf16>
    %12 = vector.extract_strided_slice %5 {offsets = [0, 128], sizes = [8, 128], strides = [1, 1]} : vector<8x384xbf16> to vector<8x128xbf16>
    %cst_10 = arith.constant dense<0.000000e+00> : vector<16x128xf32>
    %13 = tpu.matmul %11, %12, %cst_10 {dimension_numbers = #tpu.dot_dimension_numbers<[1], [0], [0], [1], [0, 0, 1, 1], [], []>} : vector<16x8xbf16>, vector<8x128xbf16>, vector<16x128xf32> -> vector<16x128xf32>
    %c2 = arith.constant 2 : index
    %c0_11 = arith.constant 0 : index
    %c0_12 = arith.constant 0 : index
    %14 = vector.load %arg3[%c2, %c0_11, %c0_12] : memref<3x16x8xbf16, #tpu.memory_space<vmem>>, vector<1x16x8xbf16>
    %15 = vector.shape_cast %14 : vector<1x16x8xbf16> to vector<16x8xbf16>
    %16 = vector.extract_strided_slice %5 {offsets = [0, 256], sizes = [8, 128], strides = [1, 1]} : vector<8x384xbf16> to vector<8x128xbf16>
    %cst_13 = arith.constant dense<0.000000e+00> : vector<16x128xf32>
    %17 = tpu.matmul %15, %16, %cst_13 {dimension_numbers = #tpu.dot_dimension_numbers<[1], [0], [0], [1], [0, 0, 1, 1], [], []>} : vector<16x8xbf16>, vector<8x128xbf16>, vector<16x128xf32> -> vector<16x128xf32>
    %18 = arith.addf %9, %13 : vector<16x128xf32>
    %19 = arith.addf %18, %17 : vector<16x128xf32>
    %c0_14 = arith.constant 0 : index
    %c0_15 = arith.constant 0 : index
    %20 = vector.load %arg4[%c0_14, %c0_15] : memref<1x128xf32, #tpu.memory_space<vmem>>, vector<1x128xf32>
    %21 = vector.broadcast %20 : vector<1x128xf32> to vector<16x128xf32>
    %22 = arith.addf %19, %21 : vector<16x128xf32>
    %cst_16 = arith.constant 0.000000e+00 : f32
    %23 = vector.broadcast %cst_16 : f32 to vector<16x128xf32>
    %24 = arith.cmpf ogt, %22, %23 : vector<16x128xf32>
    %cst_17 = arith.constant 0.00999999977 : f32
    %25 = vector.broadcast %cst_17 : f32 to vector<16x128xf32>
    %26 = arith.mulf %25, %22 : vector<16x128xf32>
    %27 = arith.select %24, %22, %26 : vector<16x128xi1>, vector<16x128xf32>
    %28 = arith.truncf %27 : vector<16x128xf32> to vector<16x128xbf16>
    %c0_18 = arith.constant 0 : index
    %c0_19 = arith.constant 0 : index
    %29 = vector.load %arg5[%c0_18, %c0_19] : memref<128x384xbf16, #tpu.memory_space<vmem>>, vector<128x384xbf16>
    %cst_20 = arith.constant dense<0.000000e+00> : vector<16x384xf32>
    %30 = tpu.matmul %28, %29, %cst_20 {dimension_numbers = #tpu.dot_dimension_numbers<[1], [0], [0], [1], [0, 0, 1, 1], [], []>} : vector<16x128xbf16>, vector<128x384xbf16>, vector<16x384xf32> -> vector<16x384xf32>
    %31 = arith.truncf %30 : vector<16x384xf32> to vector<16x384xbf16>
    %c0_21 = arith.constant 0 : index
    %c0_22 = arith.constant 0 : index
    %c0_23 = arith.constant 0 : index
    %32 = vector.load %arg6[%c0_21, %c0_22, %c0_23] : memref<3x32x16xbf16, #tpu.memory_space<vmem>>, vector<1x32x16xbf16>
    %33 = vector.shape_cast %32 : vector<1x32x16xbf16> to vector<32x16xbf16>
    %34 = vector.extract_strided_slice %31 {offsets = [0, 0], sizes = [16, 128], strides = [1, 1]} : vector<16x384xbf16> to vector<16x128xbf16>
    %cst_24 = arith.constant dense<0.000000e+00> : vector<32x128xf32>
    %35 = tpu.matmul %33, %34, %cst_24 {dimension_numbers = #tpu.dot_dimension_numbers<[1], [0], [0], [1], [0, 0, 1, 1], [], []>} : vector<32x16xbf16>, vector<16x128xbf16>, vector<32x128xf32> -> vector<32x128xf32>
    %c1_25 = arith.constant 1 : index
    %c0_26 = arith.constant 0 : index
    %c0_27 = arith.constant 0 : index
    %36 = vector.load %arg6[%c1_25, %c0_26, %c0_27] : memref<3x32x16xbf16, #tpu.memory_space<vmem>>, vector<1x32x16xbf16>
    %37 = vector.shape_cast %36 : vector<1x32x16xbf16> to vector<32x16xbf16>
    %38 = vector.extract_strided_slice %31 {offsets = [0, 128], sizes = [16, 128], strides = [1, 1]} : vector<16x384xbf16> to vector<16x128xbf16>
    %cst_28 = arith.constant dense<0.000000e+00> : vector<32x128xf32>
    %39 = tpu.matmul %37, %38, %cst_28 {dimension_numbers = #tpu.dot_dimension_numbers<[1], [0], [0], [1], [0, 0, 1, 1], [], []>} : vector<32x16xbf16>, vector<16x128xbf16>, vector<32x128xf32> -> vector<32x128xf32>
    %c2_29 = arith.constant 2 : index
    %c0_30 = arith.constant 0 : index
    %c0_31 = arith.constant 0 : index
    %40 = vector.load %arg6[%c2_29, %c0_30, %c0_31] : memref<3x32x16xbf16, #tpu.memory_space<vmem>>, vector<1x32x16xbf16>
    %41 = vector.shape_cast %40 : vector<1x32x16xbf16> to vector<32x16xbf16>
    %42 = vector.extract_strided_slice %31 {offsets = [0, 256], sizes = [16, 128], strides = [1, 1]} : vector<16x384xbf16> to vector<16x128xbf16>
    %cst_32 = arith.constant dense<0.000000e+00> : vector<32x128xf32>
    %43 = tpu.matmul %41, %42, %cst_32 {dimension_numbers = #tpu.dot_dimension_numbers<[1], [0], [0], [1], [0, 0, 1, 1], [], []>} : vector<32x16xbf16>, vector<16x128xbf16>, vector<32x128xf32> -> vector<32x128xf32>
    %44 = arith.addf %35, %39 : vector<32x128xf32>
    %45 = arith.addf %44, %43 : vector<32x128xf32>
    %c0_33 = arith.constant 0 : index
    %c0_34 = arith.constant 0 : index
    %46 = vector.load %arg7[%c0_33, %c0_34] : memref<1x128xf32, #tpu.memory_space<vmem>>, vector<1x128xf32>
    %47 = vector.broadcast %46 : vector<1x128xf32> to vector<32x128xf32>
    %48 = arith.addf %45, %47 : vector<32x128xf32>
    %cst_35 = arith.constant 0.000000e+00 : f32
    %49 = vector.broadcast %cst_35 : f32 to vector<32x128xf32>
    %50 = arith.cmpf ogt, %48, %49 : vector<32x128xf32>
    %cst_36 = arith.constant 0.00999999977 : f32
    %51 = vector.broadcast %cst_36 : f32 to vector<32x128xf32>
    %52 = arith.mulf %51, %48 : vector<32x128xf32>
    %53 = arith.select %50, %48, %52 : vector<32x128xi1>, vector<32x128xf32>
    %54 = arith.truncf %53 : vector<32x128xf32> to vector<32x128xbf16>
    %c0_37 = arith.constant 0 : index
    %c0_38 = arith.constant 0 : index
    %55 = vector.load %arg8[%c0_37, %c0_38] : memref<128x512xbf16, #tpu.memory_space<vmem>>, vector<128x512xbf16>
    %cst_39 = arith.constant dense<0.000000e+00> : vector<32x512xf32>
    %56 = tpu.matmul %54, %55, %cst_39 {dimension_numbers = #tpu.dot_dimension_numbers<[1], [0], [0], [1], [0, 0, 1, 1], [], []>} : vector<32x128xbf16>, vector<128x512xbf16>, vector<32x512xf32> -> vector<32x512xf32>
    %57 = arith.truncf %56 : vector<32x512xf32> to vector<32x512xbf16>
    %c0_40 = arith.constant 0 : index
    %c0_41 = arith.constant 0 : index
    %c0_42 = arith.constant 0 : index
    %58 = vector.load %arg9[%c0_40, %c0_41, %c0_42] : memref<4x88x32xbf16, #tpu.memory_space<vmem>>, vector<1x88x32xbf16>
    %59 = vector.shape_cast %58 : vector<1x88x32xbf16> to vector<88x32xbf16>
    %60 = vector.extract_strided_slice %57 {offsets = [0, 0], sizes = [32, 128], strides = [1, 1]} : vector<32x512xbf16> to vector<32x128xbf16>
    %cst_43 = arith.constant dense<0.000000e+00> : vector<88x128xf32>
    %61 = tpu.matmul %59, %60, %cst_43 {dimension_numbers = #tpu.dot_dimension_numbers<[1], [0], [0], [1], [0, 0, 1, 1], [], []>} : vector<88x32xbf16>, vector<32x128xbf16>, vector<88x128xf32> -> vector<88x128xf32>
    %c1_44 = arith.constant 1 : index
    %c0_45 = arith.constant 0 : index
    %c0_46 = arith.constant 0 : index
    %62 = vector.load %arg9[%c1_44, %c0_45, %c0_46] : memref<4x88x32xbf16, #tpu.memory_space<vmem>>, vector<1x88x32xbf16>
    %63 = vector.shape_cast %62 : vector<1x88x32xbf16> to vector<88x32xbf16>
    %64 = vector.extract_strided_slice %57 {offsets = [0, 128], sizes = [32, 128], strides = [1, 1]} : vector<32x512xbf16> to vector<32x128xbf16>
    %cst_47 = arith.constant dense<0.000000e+00> : vector<88x128xf32>
    %65 = tpu.matmul %63, %64, %cst_47 {dimension_numbers = #tpu.dot_dimension_numbers<[1], [0], [0], [1], [0, 0, 1, 1], [], []>} : vector<88x32xbf16>, vector<32x128xbf16>, vector<88x128xf32> -> vector<88x128xf32>
    %c2_48 = arith.constant 2 : index
    %c0_49 = arith.constant 0 : index
    %c0_50 = arith.constant 0 : index
    %66 = vector.load %arg9[%c2_48, %c0_49, %c0_50] : memref<4x88x32xbf16, #tpu.memory_space<vmem>>, vector<1x88x32xbf16>
    %67 = vector.shape_cast %66 : vector<1x88x32xbf16> to vector<88x32xbf16>
    %68 = vector.extract_strided_slice %57 {offsets = [0, 256], sizes = [32, 128], strides = [1, 1]} : vector<32x512xbf16> to vector<32x128xbf16>
    %cst_51 = arith.constant dense<0.000000e+00> : vector<88x128xf32>
    %69 = tpu.matmul %67, %68, %cst_51 {dimension_numbers = #tpu.dot_dimension_numbers<[1], [0], [0], [1], [0, 0, 1, 1], [], []>} : vector<88x32xbf16>, vector<32x128xbf16>, vector<88x128xf32> -> vector<88x128xf32>
    %c3 = arith.constant 3 : index
    %c0_52 = arith.constant 0 : index
    %c0_53 = arith.constant 0 : index
    %70 = vector.load %arg9[%c3, %c0_52, %c0_53] : memref<4x88x32xbf16, #tpu.memory_space<vmem>>, vector<1x88x32xbf16>
    %71 = vector.shape_cast %70 : vector<1x88x32xbf16> to vector<88x32xbf16>
    %72 = vector.extract_strided_slice %57 {offsets = [0, 384], sizes = [32, 128], strides = [1, 1]} : vector<32x512xbf16> to vector<32x128xbf16>
    %cst_54 = arith.constant dense<0.000000e+00> : vector<88x128xf32>
    %73 = tpu.matmul %71, %72, %cst_54 {dimension_numbers = #tpu.dot_dimension_numbers<[1], [0], [0], [1], [0, 0, 1, 1], [], []>} : vector<88x32xbf16>, vector<32x128xbf16>, vector<88x128xf32> -> vector<88x128xf32>
    %74 = arith.addf %61, %65 : vector<88x128xf32>
    %75 = arith.addf %69, %73 : vector<88x128xf32>
    %76 = arith.addf %74, %75 : vector<88x128xf32>
    %c0_55 = arith.constant 0 : index
    %c0_56 = arith.constant 0 : index
    %77 = vector.load %arg10[%c0_55, %c0_56] : memref<1x128xf32, #tpu.memory_space<vmem>>, vector<1x128xf32>
    %78 = vector.broadcast %77 : vector<1x128xf32> to vector<88x128xf32>
    %79 = arith.addf %76, %78 : vector<88x128xf32>
    %cst_57 = arith.constant 0.000000e+00 : f32
    %80 = vector.broadcast %cst_57 : f32 to vector<88x128xf32>
    %81 = arith.cmpf ogt, %79, %80 : vector<88x128xf32>
    %cst_58 = arith.constant 0.00999999977 : f32
    %82 = vector.broadcast %cst_58 : f32 to vector<88x128xf32>
    %83 = arith.mulf %82, %79 : vector<88x128xf32>
    %84 = arith.select %81, %79, %83 : vector<88x128xi1>, vector<88x128xf32>
    %c0_59 = arith.constant 0 : index
    %c0_60 = arith.constant 0 : index
    %c0_61 = arith.constant 0 : index
    %85 = vector.load %arg11[%c0_59, %c0_60, %c0_61] : memref<1x88x128xf32, #tpu.memory_space<vmem>>, vector<1x88x128xf32>
    %86 = vector.shape_cast %85 : vector<1x88x128xf32> to vector<88x128xf32>
    %87 = vector.shape_cast %84 : vector<88x128xf32> to vector<1x88x128xf32>
    tpu.vector_store %arg11[%c0_59, %c0_60, %c0_61], %87 {strides = array<i32>} : memref<1x88x128xf32, #tpu.memory_space<vmem>>, vector<1x88x128xf32>,
    return
  }
  func.func @transform_0(%arg0: i32) -> (i32, i32, i32) {
    %c0_i32 = arith.constant 0 : i32
    %c0_i32_0 = arith.constant 0 : i32
    %c0_i32_1 = arith.constant 0 : i32
    return %arg0, %c0_i32, %c0_i32_0 : i32, i32, i32
  }
  func.func @transform_1(%arg0: i32) -> (i32, i32) {
    %c0_i32 = arith.constant 0 : i32
    %c0_i32_0 = arith.constant 0 : i32
    %c0_i32_1 = arith.constant 0 : i32
    return %c0_i32, %c0_i32_0 : i32, i32
  }
  func.func @transform_2(%arg0: i32) -> (i32, i32, i32) {
    %c0_i32 = arith.constant 0 : i32
    %c0_i32_0 = arith.constant 0 : i32
    %c0_i32_1 = arith.constant 0 : i32
    %c0_i32_2 = arith.constant 0 : i32
    return %c0_i32, %c0_i32_0, %c0_i32_1 : i32, i32, i32
  }
  func.func @transform_3(%arg0: i32) -> (i32, i32) {
    %c0_i32 = arith.constant 0 : i32
    %c0_i32_0 = arith.constant 0 : i32
    %c0_i32_1 = arith.constant 0 : i32
    return %c0_i32, %c0_i32_0 : i32, i32
  }
  func.func @transform_4(%arg0: i32) -> (i32, i32) {
    %c0_i32 = arith.constant 0 : i32
    %c0_i32_0 = arith.constant 0 : i32
    %c0_i32_1 = arith.constant 0 : i32
    return %c0_i32, %c0_i32_0 : i32, i32
  }
  func.func @transform_5(%arg0: i32) -> (i32, i32, i32) {
    %c0_i32 = arith.constant 0 : i32
    %c0_i32_0 = arith.constant 0 : i32
    %c0_i32_1 = arith.constant 0 : i32
    %c0_i32_2 = arith.constant 0 : i32
    return %c0_i32, %c0_i32_0, %c0_i32_1 : i32, i32, i32
  }
  func.func @transform_6(%arg0: i32) -> (i32, i32) {
    %c0_i32 = arith.constant 0 : i32
    %c0_i32_0 = arith.constant 0 : i32
    %c0_i32_1 = arith.constant 0 : i32
    return %c0_i32, %c0_i32_0 : i32, i32
  }
  func.func @transform_7(%arg0: i32) -> (i32, i32) {
    %c0_i32 = arith.constant 0 : i32
    %c0_i32_0 = arith.constant 0 : i32
    %c0_i32_1 = arith.constant 0 : i32
    return %c0_i32, %c0_i32_0 : i32, i32
  }
  func.func @transform_8(%arg0: i32) -> (i32, i32, i32) {
    %c0_i32 = arith.constant 0 : i32
    %c0_i32_0 = arith.constant 0 : i32
    %c0_i32_1 = arith.constant 0 : i32
    %c0_i32_2 = arith.constant 0 : i32
    return %c0_i32, %c0_i32_0, %c0_i32_1 : i32, i32, i32
  }
  func.func @transform_9(%arg0: i32) -> (i32, i32) {
    %c0_i32 = arith.constant 0 : i32
    %c0_i32_0 = arith.constant 0 : i32
    %c0_i32_1 = arith.constant 0 : i32
    return %c0_i32, %c0_i32_0 : i32, i32
  }
  func.func @transform_10(%arg0: i32) -> (i32, i32, i32) {
    %c0_i32 = arith.constant 0 : i32
    %c0_i32_0 = arith.constant 0 : i32
    %c0_i32_1 = arith.constant 0 : i32
    return %arg0, %c0_i32, %c0_i32_0 : i32, i32, i32
  }
}

</mosaic_0001>

<bundles_post_ra>
// kernel: _forward.1
= control target key start
LH: loop header
LB: loop body
LE: loop exit
PB: predicated region body
PF: predicated region fallthrough
CT: control target
= control target key end

     0   :  { %15 = vsyncpa [#allocation3], 0  ;;  %s2406_s13 = smov 0   ;;  %s2813_s0 = inlined_call_operand.vmem [shape: f32[2,8,16], index: 0, kind: input, shape index: {}]   ;;  %s2814_s1 = inlined_call_operand.vmem [shape: bf16[16,384], index: 1, kind: input, shape index: {}]   ;;  %s2815_s2 = inlined_call_operand.vmem [shape: bf16[3,16,8], index: 2, kind: input, shape index: {}]   ;;  %s2816_s3 = inlined_call_operand.vmem [shape: f32[1,128], index: 3, kind: input, shape index: {}]   ;;  %s2817_s4 = inlined_call_operand.hbm [shape: bf16[128,384], index: 4, kind: input, shape index: {}]   ;;  %s2818_s5 = inlined_call_operand.vmem [shape: bf16[3,32,16], index: 5, kind: input, shape index: {}]   ;;  %s2819_s6 = inlined_call_operand.vmem [shape: f32[1,128], index: 6, kind: input, shape index: {}]   ;;  %s2820_s7 = inlined_call_operand.vmem [shape: bf16[128,512], index: 7, kind: input, shape index: {}]   ;;  %s2821_s8 = inlined_call_operand.vmem [shape: bf16[4,88,32], index: 8, kind: input, shape index: {}]   ;;  %s2822_s9 = inlined_call_operand.vmem [shape: f32[1,128], index: 9, kind: input, shape index: {}]   ;;  %s2823_s10 = inlined_call_operand.vmem [shape: f32[2,88,128], index: 10, kind: output, shape index: {}]  }
   0x1 LB: > { %s287_s16 = sshll.u32 %s2817_s4, 4  ;;  %s1749_s17 = sadd.s32 4294967295, %s2346_s13   ;;  %s2346_s13 = sphi %s2406_s13, %s21_s13   ;;  %s288_s16 = int_to_ptr.hbm [resolvable:$true] %s287_s16 }
   0x2   : > { %p1751_p0 = scmp.ge.s32.totalorder %s2346_s13, 1  ;;  %p267_p1 = scmp.lt.s32.totalorder %s2346_s13, 3 }
   0x3   : > { %p2290_p2 = scmp.eq.s32.totalorder %s1749_s17, 0  ;;  %s2348_s18 = smov [#allocation2]  }
   0x4   : > { %p268_p3 = pnand %p1751_p0, %p267_p1  ;;  %s289_s19 = sshll.u32 %s2348_s18, 4  ;;  %s290_s19 = int_to_ptr.vmem [resolvable:$true] %s289_s19 }
   0x5   : > { %s2349_s20 = smov 192   ;;  %s2350_s21 = smov 12  }
   0x6   : > { %p2286_p4 = pneg %p268_p3  ;;  %327 = sbr.rel (%p268_p3) target bundleno = 1001 (0x3e9), region = 60 }
   0x8   : > { %p2287_p5 = pnand %p2290_p2, %p2286_p4 }
   0xa   : > { %2289 = dma.hbm_to_vmem [thread:$0]  (!%p2287_p5), %s288_s16, 3072, %s290_s19, [#allocation3], %s2349_s20, %s2349_s20, %s2350_s21  }
   0xb   : > { %2341 = dma.done.wait (%p2290_p2), [#allocation3], 3072  }
   0xc   : > { %2343 = vsyncadd (%p2290_p2), [#allocation3], 4294964224  ;;  %p365_p6 = scmp.lt.s32.totalorder %s1749_s17, 1  ;;  %v1760_v0 = vld [vmem:[%s2814_s1] sm:$0xf]  ;;  %vm397_vm0 = vcmask 130048  }
   0xd   : > { %v2194_v1 = vld [vmem:[%s2814_s1 + $0x8] sm:$0xf0]  ;;  %v2193_v2 = vld [vmem:[%s2814_s1 + $0x4] sm:$0xf]  ;;  %v1762_v4 = vld [vmem:[%s2814_s1 + $0xc] sm:$0xf0] }
   0xe   : > { %s2825_s17 = smov (!%p365_p6, %s1749_s17), 1  ;;  %v1761_v3 = vor.u32 %v2194_v1, %v1760_v0  ;;  %v1768_v5 = vld [vmem:[%s2814_s1 + $0x8] sm:$0xf]  ;;  %v2195_v6 = vld [vmem:[%s2814_s1 + $0x10] sm:$0xf0]  ;;  %v1765_v7 = vor.u32 %v2193_v2, %v1762_v4  ;;  %vm459_vm1 = vcmask 1043456  }
   0xf   : > { %s1756_s22 = sshll.u32 %s2825_s17, 3  ;;  %v1769_v8 = vor.u32 %v2195_v6, %v1768_v5  ;;  %v1878_v11 = vld [vmem:[#allocation2 + $0xa8] sm:$0xf]  ;;  %v2221_v12 = vld [vmem:[#allocation2 + $0xb0] sm:$0xf0]  ;;  %v2196_v21 = vld [vmem:[%s2815_s2] sm:$0xff] }
  0x10   : > { %s368_s25 = scalar_lea.vmem %s2813_s0, %s1756_s22  ;;  %408 = vmatpush.bf16.msra.mxu0 %v1761_v3  ;;  %421 = vmatpush.bf16.msra.mxu1 %v1765_v7  ;;  %v1879_v13 = vor.u32 %v2221_v12, %v1878_v11  ;;  %v2220_v17 = vld [vmem:[#allocation2 + $0xac] sm:$0xf]  ;;  %v1880_v18 = vld [vmem:[#allocation2 + $0xb4] sm:$0xf0]  ;;  %vm455_vm2 = vcmask 64512   ;;  %v2198_v34 = vld [vmem:[%s2815_s2 + $0x10] sm:$0xff] }
  0x11   : > { %v375_v9 = vld [vmem:[%s368_s25] sm:$0xff]  ;;  %434 = vmatpush.bf16.msra.mxu2 %v1769_v8  ;;  %v1886_v22 = vld [vmem:[#allocation2 + $0xb0] sm:$0xf]  ;;  %v2222_v23 = vld [vmem:[#allocation2 + $0xb8] sm:$0xf0]  ;;  %v1883_v25 = vor.u32 %v2220_v17, %v1880_v18  ;;  %vm1251_vm9 = vcmask 261120  }
  0x12   : > { %v376_v10 = vpack.c.bf16 %v375_v9, %v375_v9  ;;  %v2197_v30 = vld [vmem:[%s2815_s2 + $0x8] sm:$0xff]  ;;  %v1887_v31 = vor.u32 %v2222_v23, %v1886_v22  ;;  %v1866_v36 = vld [vmem:[#allocation2 + $0x90] sm:$0xf]  ;;  %v2218_v37 = vld [vmem:[#allocation2 + $0x98] sm:$0xf0]  ;;  %s2281_s22 = smul.u32 88, %s2825_s17 }
  0x13   : > { %v2217_v38 = vld [vmem:[#allocation2 + $0x94] sm:$0xf]  ;;  %v1867_v39 = vor.u32 %v2218_v37, %v1866_v36  ;;  %v1868_v40 = vld [vmem:[#allocation2 + $0x9c] sm:$0xf0]  ;;  %v1874_v41 = vld [vmem:[#allocation2 + $0x98] sm:$0xf] }
  0x14   : > { %1770 = vmatmul.msk.bf16.vlgmr.msra.gmra.mxu0 %vm397_vm0, %v376_v10  ;;  %1771 = vmatmul.msk.bf16.vlgmr.msra.gmra.mxu1 %vm397_vm0, %v376_v10  ;;  %v2219_v42 = vld [vmem:[#allocation2 + $0xa0] sm:$0xf0]  ;;  %v1871_v43 = vor.u32 %v2217_v38, %v1868_v40  ;;  %v1854_v45 = vld [vmem:[#allocation2 + $0x78] sm:$0xf]  ;;  %v2214_v47 = vld [vmem:[#allocation2 + $0x7c] sm:$0xf]  ;;  %s2787_s25 = scalar_lea.vmem %s2823_s10, %s2281_s22 }
  0x15   : > { %1772 = vmatmul.msk.bf16.vlgmr.msra.gmra.mxu2 %vm397_vm0, %v376_v10  ;;  %v1875_v44 = vor.u32 %v2219_v42, %v1874_v41  ;;  %v2215_v46 = vld [vmem:[#allocation2 + $0x80] sm:$0xf0]  ;;  %v1856_v49 = vld [vmem:[#allocation2 + $0x84] sm:$0xf0]  ;;  %v1862_v50 = vld [vmem:[#allocation2 + $0x80] sm:$0xf] }
  0x16   : > { %705 = vmatpush.bf16.msrb.mxu2 %v1879_v13  ;;  %v1855_v48 = vor.u32 %v2215_v46, %v1854_v45  ;;  %v2216_v51 = vld [vmem:[#allocation2 + $0x88] sm:$0xf0]  ;;  %v1859_v52 = vor.u32 %v2214_v47, %v1856_v49  ;;  %v1842_v54 = vld [vmem:[#allocation2 + $0x60] sm:$0xf]  ;;  %v2211_v56 = vld [vmem:[#allocation2 + $0x64] sm:$0xf] }
  0x17   : > { %v1863_v53 = vor.u32 %v2216_v51, %v1862_v50  ;;  %v2212_v55 = vld [vmem:[#allocation2 + $0x68] sm:$0xf0]  ;;  %v1844_v58 = vld [vmem:[#allocation2 + $0x6c] sm:$0xf0]  ;;  %v1850_v59 = vld [vmem:[#allocation2 + $0x68] sm:$0xf] }
  0x18   : > { %v1843_v57 = vor.u32 %v2212_v55, %v1842_v54  ;;  %v2213_v60 = vld [vmem:[#allocation2 + $0x70] sm:$0xf0]  ;;  %v1847_v61 = vor.u32 %v2211_v56, %v1844_v58  ;;  %v1830_v63 = vld [vmem:[#allocation2 + $0x48] sm:$0xf]  ;;  %v2208_v1 = vld [vmem:[#allocation2 + $0x4c] sm:$0xf] }
  0x19   : > { %v1851_v62 = vor.u32 %v2213_v60, %v1850_v59  ;;  %v2209_v0 = vld [vmem:[#allocation2 + $0x50] sm:$0xf0]  ;;  %v1832_v3 = vld [vmem:[#allocation2 + $0x54] sm:$0xf0]  ;;  %v1838_v4 = vld [vmem:[#allocation2 + $0x50] sm:$0xf] }
  0x1a   : > { %706 = vmatpush.bf16.msrb.mxu2 %v1867_v39  ;;  %v1831_v2 = vor.u32 %v2209_v0, %v1830_v63  ;;  %v1835_v5 = vor.u32 %v2208_v1, %v1832_v3  ;;  %v2210_v6 = vld [vmem:[#allocation2 + $0x58] sm:$0xf0]  ;;  %v1818_v8 = vld [vmem:[#allocation2 + $0x30] sm:$0xf]  ;;  %v2205_v10 = vld [vmem:[#allocation2 + $0x34] sm:$0xf] }
  0x1b   : > { %v1839_v7 = vor.u32 %v2210_v6, %v1838_v4  ;;  %v2206_v9 = vld [vmem:[#allocation2 + $0x38] sm:$0xf0]  ;;  %v1820_v12 = vld [vmem:[#allocation2 + $0x3c] sm:$0xf0]  ;;  %v1826_v13 = vld [vmem:[#allocation2 + $0x38] sm:$0xf] }
  0x1c   : > { %v1819_v11 = vor.u32 %v2206_v9, %v1818_v8  ;;  %v1806_v17 = vld [vmem:[#allocation2 + $0x18] sm:$0xf]  ;;  %v2203_v18 = vld [vmem:[#allocation2 + $0x20] sm:$0xf0]  ;;  %v1814_v22 = vld [vmem:[#allocation2 + $0x20] sm:$0xf] }
  0x1d   : > { %v2204_v23 = vld [vmem:[#allocation2 + $0x28] sm:$0xf0]  ;;  %v2303_v40 = vld [vmem:[%s2816_s3] ss:$0 sm:$0xff]  ;;  %v2042_v59 = vld [vmem:[%s2820_s7 + $0xf0] sm:$0xf0] }
  0x1e   : > { %707 = vmatpush.bf16.msrb.mxu2 %v1855_v48  ;;  %v2260_v63 = vld [vmem:[%s2820_s7 + $0xf4] sm:$0xf0]  ;;  %v2253_v0 = vld [vmem:[%s2820_s7 + $0xc4] sm:$0xf]  ;;  %v2026_v1 = vld [vmem:[%s2820_s7 + $0xd0] sm:$0xf0] }
  0x1f   : > { %v2029_v4 = vor.u32 %v2253_v0, %v2026_v1  ;;  %v2241_v1 = vld [vmem:[%s2820_s7 + $0x64] sm:$0xf] }
  0x22   : > { %708 = vmatpush.bf16.msrb.mxu2 %v1843_v57  ;;  %v2257_v57 = vld [vmem:[%s2820_s7 + $0xe4] sm:$0xf] }
  0x26   : > { %709 = vmatpush.bf16.msrb.mxu2 %v1831_v2 }
  0x2a   : > { %710 = vmatpush.bf16.msrb.mxu2 %v1819_v11  ;;  %v2040_v11 = vld [vmem:[%s2820_s7 + $0xe0] sm:$0xf] }
  0x91   : > { %v410_v14 = vpop.f32.mrf.mxu0  ;;  %v423_v15 = vpop.f32.mrf.mxu1 }
  0x92   : > { %v440_v16 = vpack.c.bf16 %v423_v15, %v410_v14  ;;  %v2207_v14 = vld [vmem:[#allocation2 + $0x40] sm:$0xf0]  ;;  %v1823_v15 = vor.u32 %v2205_v10, %v1820_v12 }
  0x93   : > { %v2227_v10 = vld [vmem:[%s2818_s5 + $0x20] sm:$0xff] }
  0x94   : > { %v514_v19 = vsel %vm459_vm1, %v440_v16, 0  ;;  %v453_v20 = vunpack.c.h.b16 %v440_v16  ;;  %v1827_v16 = vor.u32 %v2207_v14, %v1826_v13  ;;  %v2259_v13 = vld [vmem:[%s2820_s7 + $0xec] sm:$0xf0]  ;;  %v2258_v14 = vld [vmem:[%s2820_s7 + $0xec] sm:$0xf] }
  0x95   : > { %523 = vmatpush.bf16.msrb.mxu1 %v514_v19  ;;  %v2202_v19 = vld [vmem:[#allocation2 + $0x1c] sm:$0xf] }
  0x96   : > { %v454_v24 = vpack.c.b16 %v453_v20, %v453_v20  ;;  %v1807_v20 = vor.u32 %v2203_v18, %v1806_v17  ;;  %v2256_v17 = vld [vmem:[%s2820_s7 + $0xd4] sm:$0xf0] }
  0x98   : > { %v436_v26 = vpop.f32.mrf.mxu2  ;;  %v461_v29 = vsel %vm459_vm1, %v454_v24, 0  ;;  %1791 = vmatmul.msk.bf16.vlgmr.msrb.gmra.mxu1 %vm455_vm2, %v2196_v21  ;;  %v1808_v21 = vld [vmem:[#allocation2 + $0x24] sm:$0xf0]  ;;  %711 = vmatpush.bf16.msrb.mxu2 %v1807_v20 }
  0x99   : > { %v441_v27 = vpack.c.bf16 %v436_v26, %v436_v26  ;;  %v412_v28 = vpop.f32.mrf.mxu0  ;;  %v425_v32 = vpop.f32.mrf.mxu1  ;;  %470 = vmatpush.bf16.msra.mxu3 %v461_v29  ;;  %v1811_v24 = vor.u32 %v2202_v19, %v1808_v21  ;;  %v1794_v26 = vld [vmem:[#allocation2] sm:$0xf] }
  0x9a   : > { %v2199_v28 = vld [vmem:[#allocation2 + $0x4] sm:$0xf]  ;;  %v2201_v32 = vld [vmem:[#allocation2 + $0x10] sm:$0xf0] }
  0x9b   : > { %v489_v33 = vsel %vm459_vm1, %v441_v27, 0  ;;  %v2200_v27 = vld [vmem:[#allocation2 + $0x8] sm:$0xf0] }
  0x9c   : > { %498 = vmatpush.bf16.msrb.mxu0 %v489_v33  ;;  %1779 = vmatmul.msk.bf16.vlgmr.msra.gmra.mxu3 %vm455_vm2, %v2197_v30  ;;  %v1795_v29 = vor.u32 %v2200_v27, %v1794_v26  ;;  %v1796_v30 = vld [vmem:[#allocation2 + $0xc] sm:$0xf0] }
  0x9d   : > { %719 = vmatpush.bf16.msrb.mxu3 %v1883_v25  ;;  %v1815_v25 = vor.u32 %v2204_v23, %v1814_v22  ;;  %v1799_v33 = vor.u32 %v2199_v28, %v1796_v30  ;;  %v2041_v22 = vor.u32 %v2259_v13, %v2040_v11  ;;  %v2255_v27 = vld [vmem:[%s2820_s7 + $0xcc] sm:$0xf0]  ;;  %v2034_v30 = vld [vmem:[%s2820_s7 + $0xd8] sm:$0xf0] }
  0x9e   : > { %712 = vmatpush.bf16.msrb.mxu2 %v1795_v29  ;;  %v2254_v29 = vld [vmem:[%s2820_s7 + $0xcc] sm:$0xf]  ;;  %v2239_v11 = vld [vmem:[%s2820_s7 + $0x4c] sm:$0xf0] }
  0x9f   : > { %1786 = vmatmul.msk.bf16.vlgmr.msrb.gmra.mxu0 %vm455_vm2, %v2198_v34 }
  0xa0   : > { %733 = vmatpush.bf16.msra.mxu0 %v1887_v31  ;;  %v438_v35 = vpop.f32.mrf.mxu2  ;;  %v1802_v31 = vld [vmem:[#allocation2 + $0x8] sm:$0xf] }
  0xa1   : > { %720 = vmatpush.bf16.msrb.mxu3 %v1871_v43  ;;  %v1803_v34 = vor.u32 %v2201_v32, %v1802_v31  ;;  %v2225_v31 = vld [vmem:[%s2818_s5 + $0x10] sm:$0xff]  ;;  %v2223_v32 = vld [vmem:[%s2818_s5] sm:$0xff] }
  0xa4   : > { %734 = vmatpush.bf16.msra.mxu0 %v1875_v44 }
  0xa5   : > { %721 = vmatpush.bf16.msrb.mxu3 %v1859_v52 }
  0xa8   : > { %735 = vmatpush.bf16.msra.mxu0 %v1863_v53 }
  0xa9   : > { %722 = vmatpush.bf16.msrb.mxu3 %v1847_v61  ;;  %v2045_v61 = vor.u32 %v2257_v57, %v2042_v59  ;;  %v2246_v59 = vld [vmem:[%s2820_s7 + $0x8c] sm:$0xf] }
  0xac   : > { %736 = vmatpush.bf16.msra.mxu0 %v1851_v62  ;;  %v2048_v62 = vld [vmem:[%s2820_s7 + $0xe8] sm:$0xf] }
  0xad   : > { %723 = vmatpush.bf16.msrb.mxu3 %v1835_v5  ;;  %v2049_v6 = vor.u32 %v2260_v63, %v2048_v62  ;;  %v1976_v62 = vld [vmem:[%s2820_s7 + $0x60] sm:$0xf]  ;;  %v2243_v63 = vld [vmem:[%s2820_s7 + $0x6c] sm:$0xf0] }
  0xae   : > { %v1977_v0 = vor.u32 %v2243_v63, %v1976_v62 }
  0xb0   : > { %737 = vmatpush.bf16.msra.mxu0 %v1839_v7 }
  0xb1   : > { %724 = vmatpush.bf16.msrb.mxu3 %v1823_v15  ;;  %v2050_v15 = vld [vmem:[%s2820_s7 + $0xf8] sm:$0xf0] }
  0xb2   : > { %v2053_v23 = vor.u32 %v2258_v14, %v2050_v15  ;;  %v1962_v14 = vld [vmem:[%s2820_s7 + $0x50] sm:$0xf0]  ;;  %v1968_v15 = vld [vmem:[%s2820_s7 + $0x48] sm:$0xf] }
  0xb4   : > { %738 = vmatpush.bf16.msra.mxu0 %v1827_v16  ;;  %v2032_v16 = vld [vmem:[%s2820_s7 + $0xc8] sm:$0xf] }
  0xb5   : > { %725 = vmatpush.bf16.msrb.mxu3 %v1811_v24  ;;  %v2024_v24 = vld [vmem:[%s2820_s7 + $0xc0] sm:$0xf]  ;;  %v2033_v28 = vor.u32 %v2256_v17, %v2032_v16  ;;  %v2240_v16 = vld [vmem:[%s2820_s7 + $0x54] sm:$0xf0] }
  0xb8   : > { %739 = vmatpush.bf16.msra.mxu0 %v1815_v25 }
  0xb9   : > { %726 = vmatpush.bf16.msrb.mxu3 %v1799_v33  ;;  %v2025_v33 = vor.u32 %v2255_v27, %v2024_v24  ;;  %v2233_v24 = vld [vmem:[%s2820_s7 + $0x24] sm:$0xf]  ;;  %v1952_v27 = vld [vmem:[%s2820_s7 + $0x28] sm:$0xf] }
  0xbc   : > { %740 = vmatpush.bf16.msra.mxu0 %v1803_v34  ;;  %v2037_v34 = vor.u32 %v2254_v29, %v2034_v30 }
  0xc0   : > { %1123 = vmatpush.bf16.msrb.mxu0 %v2045_v61 }
  0xc4   : > { %1124 = vmatpush.bf16.msrb.mxu0 %v2029_v4 }
 0x115   : > { %v525_v35 = vpop.f32.mrf.mxu1 }
 0x11c   : > { %v500_v36 = vpop.f32.mrf.mxu0 }
 0x11d   : > { %v527_v41 = vpop.f32.mrf.mxu1 }
 0x11f   : > { %v472_v37 = vpop.f32.mrf.mxu3 }
 0x120   : > { %v526_v38 = vadd.f32 %v525_v35, %v472_v37  ;;  %v2228_v35 = vld [vmem:[%s2818_s5 + $0x28] sm:$0xff] }
 0x121   : > { %v2224_v37 = vld [vmem:[%s2818_s5 + $0x8] sm:$0xff] }
 0x122   : > { %v530_v39 = vadd.f32 %v526_v38, %v500_v36  ;;  %v2226_v36 = vld [vmem:[%s2818_s5 + $0x18] sm:$0xff]  ;;  %v2008_v38 = vld [vmem:[%s2820_s7 + $0xa0] sm:$0xf] }
 0x124   : > { %v536_v43 = vadd.f32 %v2303_v40, %v530_v39  ;;  %v502_v45 = vpop.f32.mrf.mxu0  ;;  %v2251_v39 = vld [vmem:[%s2820_s7 + $0xac] sm:$0xf0] }
 0x126   : > { %v540_v47 = vmul.f32 0.01, %v536_v43  ;;  %vm538_vm3 = vcmp.gt.f32.partialorder %v536_v43, 0.0 }
 0x127   : > { %v474_v42 = vpop.f32.mrf.mxu3 }
 0x128   : > { %v528_v44 = vadd.f32 %v527_v41, %v474_v42  ;;  %v542_v50 = vsel %vm538_vm3, %v536_v43, %v540_v47  ;;  %v2009_v41 = vor.u32 %v2251_v39, %v2008_v38  ;;  %v2010_v42 = vld [vmem:[%s2820_s7 + $0xb0] sm:$0xf0]  ;;  %v2016_v43 = vld [vmem:[%s2820_s7 + $0xa8] sm:$0xf]  ;;  %v2250_v47 = vld [vmem:[%s2820_s7 + $0xac] sm:$0xf] }
 0x129   : > { %v1930_v38 = vld [vmem:[%s2820_s7 + $0x10] sm:$0xf0]  ;;  %v1936_v39 = vld [vmem:[%s2820_s7 + $0x8] sm:$0xf] }
 0x12a   : > { %v531_v46 = vadd.f32 %v528_v44, %v502_v45  ;;  %v2252_v44 = vld [vmem:[%s2820_s7 + $0xb4] sm:$0xf0] }
 0x12c   : > { %v537_v48 = vadd.f32 %v2303_v40, %v531_v46  ;;  %v2249_v40 = vld [vmem:[%s2820_s7 + $0xa4] sm:$0xf]  ;;  %v2017_v46 = vor.u32 %v2252_v44, %v2016_v43  ;;  %v2230_v43 = vld [vmem:[%s2820_s7 + $0xc] sm:$0xf]  ;;  %v1938_v44 = vld [vmem:[%s2820_s7 + $0x18] sm:$0xf0] }
 0x12d   : > { %v2013_v45 = vor.u32 %v2249_v40, %v2010_v42  ;;  %v2232_v40 = vld [vmem:[%s2820_s7 + $0x14] sm:$0xf0] }
 0x12e   : > { %v541_v49 = vmul.f32 0.01, %v537_v48  ;;  %vm539_vm4 = vcmp.gt.f32.partialorder %v537_v48, 0.0  ;;  %v1937_v42 = vor.u32 %v2232_v40, %v1936_v39 }
 0x12f   : > { %1125 = vmatpush.bf16.msrb.mxu0 %v2013_v45  ;;  %v1941_v45 = vor.u32 %v2230_v43, %v1938_v44 }
 0x130   : > { %v543_v51 = vsel %vm539_vm4, %v537_v48, %v541_v49  ;;  %v2018_v48 = vld [vmem:[%s2820_s7 + $0xb8] sm:$0xf0] }
 0x131   : > { %v544_v52 = vpack.c.bf16 %v543_v51, %v542_v50  ;;  %v2021_v49 = vor.u32 %v2250_v47, %v2018_v48  ;;  %v1992_v50 = vld [vmem:[%s2820_s7 + $0x80] sm:$0xf]  ;;  %v2247_v51 = vld [vmem:[%s2820_s7 + $0x8c] sm:$0xf0] }
 0x133   : > { %713 = vmatmul.bf16.vlgmr.msrb.gmra.mxu2 %v544_v52  ;;  %727 = vmatmul.bf16.vlgmr.msrb.gmra.mxu3 %v544_v52 }
 0x134   : > { %741 = vmatmul.bf16.vlgmr.msra.gmra.mxu0 %v544_v52  ;;  %v2245_v52 = vld [vmem:[%s2820_s7 + $0x84] sm:$0xf] }
 0x1b1   : > { %v742_v53 = vpop.f32.mrf.mxu0 }
 0x1b2   : > { %v748_v56 = vpack.c.bf16 %v742_v53, %v742_v53  ;;  %v1993_v53 = vor.u32 %v2247_v51, %v1992_v50 }
 0x1b4   : > { %v818_v2 = vunpack.c.l.b16 %v748_v56  ;;  %v2248_v56 = vld [vmem:[%s2820_s7 + $0x94] sm:$0xf0] }
 0x1b6   : > { %v714_v54 = vpop.f32.mrf.mxu2  ;;  %v728_v55 = vpop.f32.mrf.mxu3 }
 0x1b7   : > { %v747_v5 = vpack.c.bf16 %v728_v55, %v714_v54  ;;  %v1994_v54 = vld [vmem:[%s2820_s7 + $0x90] sm:$0xf0]  ;;  %v2000_v55 = vld [vmem:[%s2820_s7 + $0x88] sm:$0xf] }
 0x1b8   : > { %v1997_v57 = vor.u32 %v2245_v52, %v1994_v54  ;;  %v2304_v52 = vld [vmem:[%s2819_s6] ss:$0 sm:$0xff] }
 0x1b9   : > { %v744_v58 = vpop.f32.mrf.mxu0  ;;  %v772_v18 = vunpack.c.h.b16 %v747_v5  ;;  %v857_v19 = vunpack.c.l.b16 %v747_v5  ;;  %v2244_v5 = vld [vmem:[%s2820_s7 + $0x74] sm:$0xf0] }
 0x1ba   : > { %v750_v60 = vpack.c.bf16 %v744_v58, %v744_v58  ;;  %v2001_v58 = vor.u32 %v2248_v56, %v2000_v55  ;;  %1126 = vmatpush.bf16.msrb.mxu0 %v1997_v57 }
 0x1bc   : > { %v819_v3 = vunpack.c.l.b16 %v750_v60  ;;  %v2002_v60 = vld [vmem:[%s2820_s7 + $0x98] sm:$0xf0] }
 0x1bd   : > { %v2005_v61 = vor.u32 %v2246_v59, %v2002_v60 }
 0x1be   : > { %v820_v7 = vpack.c.b16 %v819_v3, %v818_v2  ;;  %v716_v8 = vpop.f32.mrf.mxu2  ;;  %v730_v9 = vpop.f32.mrf.mxu3  ;;  %v1978_v2 = vld [vmem:[%s2820_s7 + $0x70] sm:$0xf0]  ;;  %v1984_v3 = vld [vmem:[%s2820_s7 + $0x68] sm:$0xf] }
 0x1bf   : > { %v749_v12 = vpack.c.bf16 %v730_v9, %v716_v8  ;;  %v1981_v4 = vor.u32 %v2241_v1, %v1978_v2  ;;  %v1985_v8 = vor.u32 %v2244_v5, %v1984_v3 }
 0x1c0   : > { %835 = vmatpush.bf16.msra.mxu2 %v820_v7  ;;  %v1986_v7 = vld [vmem:[%s2820_s7 + $0x78] sm:$0xf0] }
 0x1c1   : > { %v773_v20 = vunpack.c.h.b16 %v749_v12  ;;  %v858_v21 = vunpack.c.l.b16 %v749_v12  ;;  %1127 = vmatpush.bf16.msrb.mxu0 %v1981_v4  ;;  %v2237_v12 = vld [vmem:[%s2820_s7 + $0x44] sm:$0xf] }
 0x1c2   : > { %v1965_v17 = vor.u32 %v2237_v12, %v1962_v14 }
 0x1c3   : > { %v774_v25 = vpack.c.b16 %v773_v20, %v772_v18  ;;  %v859_v26 = vpack.c.b16 %v858_v21, %v857_v19  ;;  %1914 = vmatmul.msk.bf16.vlgmr.msra.gmra.mxu2 %vm397_vm0, %v2227_v10  ;;  %v1960_v10 = vld [vmem:[%s2820_s7 + $0x40] sm:$0xf]  ;;  %v1969_v18 = vor.u32 %v2240_v16, %v1968_v15  ;;  %v2238_v19 = vld [vmem:[%s2820_s7 + $0x4c] sm:$0xf]  ;;  %v1970_v20 = vld [vmem:[%s2820_s7 + $0x58] sm:$0xf0] }
 0x1c4   : > { %1142 = vmatpush.bf16.msrb.mxu2 %v2049_v6  ;;  %v2242_v6 = vld [vmem:[%s2820_s7 + $0x6c] sm:$0xf]  ;;  %v1961_v13 = vor.u32 %v2239_v11, %v1960_v10  ;;  %v1973_v21 = vor.u32 %v2238_v19, %v1970_v20 }
 0x1c5   : > { %789 = vmatpush.bf16.msra.mxu1 %v774_v25  ;;  %874 = vmatpush.bf16.msra.mxu3 %v859_v26  ;;  %v1989_v9 = vor.u32 %v2242_v6, %v1986_v7  ;;  %v1946_v26 = vld [vmem:[%s2820_s7 + $0x30] sm:$0xf0] }
 0x1c6   : > { %1128 = vmatpush.bf16.msrb.mxu0 %v1965_v17  ;;  %v1949_v29 = vor.u32 %v2233_v24, %v1946_v26 }
 0x1c8   : > { %1143 = vmatpush.bf16.msrb.mxu2 %v2033_v28  ;;  %1900 = vmatmul.msk.bf16.vlgmr.msra.gmra.mxu1 %vm397_vm0, %v2225_v31  ;;  %v2236_v28 = vld [vmem:[%s2820_s7 + $0x34] sm:$0xf0]  ;;  %v2234_v31 = vld [vmem:[%s2820_s7 + $0x2c] sm:$0xf] }
 0x1c9   : > { %1104 = vmatpush.bf16.msrb.mxu1 %v2041_v22  ;;  %1161 = vmatpush.bf16.msrb.mxu3 %v2053_v23  ;;  %v1944_v22 = vld [vmem:[%s2820_s7 + $0x20] sm:$0xf]  ;;  %v2235_v23 = vld [vmem:[%s2820_s7 + $0x2c] sm:$0xf0]  ;;  %v1953_v30 = vor.u32 %v2236_v28, %v1952_v27 }
 0x1ca   : > { %1924 = vmatmul.msk.bf16.vlgmr.msra.gmra.mxu3 %vm397_vm0, %v2223_v32  ;;  %v1945_v25 = vor.u32 %v2235_v23, %v1944_v22  ;;  %v1954_v32 = vld [vmem:[%s2820_s7 + $0x38] sm:$0xf0]  ;;  %1129 = vmatpush.bf16.msrb.mxu0 %v1949_v29 }
 0x1cc   : > { %1144 = vmatpush.bf16.msrb.mxu2 %v2017_v46 }
 0x1cd   : > { %1105 = vmatpush.bf16.msrb.mxu1 %v2025_v33  ;;  %1162 = vmatpush.bf16.msrb.mxu3 %v2037_v34  ;;  %v1957_v33 = vor.u32 %v2234_v31, %v1954_v32  ;;  %v1928_v34 = vld [vmem:[%s2820_s7] sm:$0xf] }
 0x1d0   : > { %1145 = vmatpush.bf16.msrb.mxu2 %v2001_v58 }
 0x1d1   : > { %1106 = vmatpush.bf16.msrb.mxu1 %v2009_v41  ;;  %1163 = vmatpush.bf16.msrb.mxu3 %v2021_v49 }
 0x1d3   : > { %1915 = vmatmul.msk.bf16.gmra.mxu2 %vm397_vm0, %v2228_v35  ;;  %v2231_v35 = vld [vmem:[%s2820_s7 + $0xc] sm:$0xf0] }
 0x1d4   : > { %1146 = vmatpush.bf16.msrb.mxu2 %v1985_v8 }
 0x1d5   : > { %1107 = vmatpush.bf16.msrb.mxu1 %v1993_v53  ;;  %1164 = vmatpush.bf16.msrb.mxu3 %v2005_v61 }
 0x1d8   : > { %1901 = vmatmul.msk.bf16.gmra.mxu1 %vm397_vm0, %v2226_v36  ;;  %1147 = vmatpush.bf16.msrb.mxu2 %v1969_v18  ;;  %v2229_v36 = vld [vmem:[%s2820_s7 + $0x4] sm:$0xf] }
 0x1d9   : > { %1108 = vmatpush.bf16.msrb.mxu1 %v1977_v0  ;;  %1165 = vmatpush.bf16.msrb.mxu3 %v1989_v9  ;;  %v1933_v41 = vor.u32 %v2229_v36, %v1930_v38 }
 0x1da   : > { %1925 = vmatmul.msk.bf16.gmra.mxu3 %vm397_vm0, %v2224_v37  ;;  %v1929_v37 = vor.u32 %v2231_v35, %v1928_v34 }
 0x1db   : > { %1130 = vmatpush.bf16.msrb.mxu0 %v1933_v41 }
 0x1dc   : > { %1148 = vmatpush.bf16.msrb.mxu2 %v1953_v30 }
 0x1dd   : > { %1109 = vmatpush.bf16.msrb.mxu1 %v1961_v13  ;;  %1166 = vmatpush.bf16.msrb.mxu3 %v1973_v21 }
 0x1e0   : > { %1149 = vmatpush.bf16.msrb.mxu2 %v1937_v42 }
 0x1e1   : > { %1110 = vmatpush.bf16.msrb.mxu1 %v1945_v25  ;;  %1167 = vmatpush.bf16.msrb.mxu3 %v1957_v33 }
 0x1e5   : > { %1111 = vmatpush.bf16.msrb.mxu1 %v1929_v37  ;;  %1168 = vmatpush.bf16.msrb.mxu3 %v1941_v45 }
 0x245   : > { %v791_v46 = vpop.f32.mrf.mxu1 }
 0x246   : > { %v837_v47 = vpop.f32.mrf.mxu2 }
 0x24d   : > { %v876_v48 = vpop.f32.mrf.mxu3  ;;  %v793_v50 = vpop.f32.mrf.mxu1 }
 0x24e   : > { %v877_v49 = vadd.f32 %v876_v48, %v791_v46  ;;  %v839_v53 = vpop.f32.mrf.mxu2 }
 0x250   : > { %v886_v51 = vadd.f32 %v877_v49, %v837_v47 }
 0x252   : > { %v894_v55 = vadd.f32 %v2304_v52, %v886_v51 }
 0x254   : > { %v902_v58 = vmul.f32 0.01, %v894_v55  ;;  %vm898_vm5 = vcmp.gt.f32.partialorder %v894_v55, 0.0 }
 0x255   : > { %v878_v54 = vpop.f32.mrf.mxu3  ;;  %v796_v60 = vpop.f32.mrf.mxu1 }
 0x256   : > { %v879_v56 = vadd.f32 %v878_v54, %v793_v50  ;;  %v842_v62 = vpop.f32.mrf.mxu2  ;;  %v906_v1 = vsel %vm898_vm5, %v894_v55, %v902_v58  ;;  %v2266_v58 = vld [vmem:[%s2821_s8 + $0x2c] sm:$0xff] }
 0x258   : > { %v887_v57 = vadd.f32 %v879_v56, %v839_v53 }
 0x25a   : > { %v895_v59 = vadd.f32 %v2304_v52, %v887_v57  ;;  %v2261_v57 = vld [vmem:[%s2821_s8] sm:$0xff] }
 0x25c   : > { %vm899_vm6 = vcmp.gt.f32.partialorder %v895_v59, 0.0  ;;  %v903_v61 = vmul.f32 0.01, %v895_v59 }
 0x25d   : > { %v881_v63 = vpop.f32.mrf.mxu3  ;;  %v798_v5 = vpop.f32.mrf.mxu1 }
 0x25e   : > { %v882_v0 = vadd.f32 %v881_v63, %v796_v60  ;;  %v907_v2 = vsel %vm899_vm6, %v895_v59, %v903_v61  ;;  %v844_v9 = vpop.f32.mrf.mxu2 }
 0x25f   : > { %v910_v3 = vpack.c.bf16 %v907_v2, %v906_v1 }
 0x260   : > { %v888_v4 = vadd.f32 %v882_v0, %v842_v62 }
 0x261   : > { %1112 = vmatmul.bf16.vlgmr.msrb.gmra.mxu1 %v910_v3  ;;  %1131 = vmatmul.bf16.vlgmr.msrb.gmra.mxu0 %v910_v3 }
 0x262   : > { %1150 = vmatmul.bf16.vlgmr.msrb.gmra.mxu2 %v910_v3  ;;  %1169 = vmatmul.bf16.vlgmr.msrb.gmra.mxu3 %v910_v3  ;;  %v896_v7 = vadd.f32 %v2304_v52, %v888_v4  ;;  %v2271_v3 = vld [vmem:[%s2821_s8 + $0x58] sm:$0xff]  ;;  %v2276_v4 = vld [vmem:[%s2821_s8 + $0x84] sm:$0xff] }
 0x264   : > { %v904_v11 = vmul.f32 0.01, %v896_v7  ;;  %vm900_vm7 = vcmp.gt.f32.partialorder %v896_v7, 0.0 }
 0x265   : > { %v883_v6 = vpop.f32.mrf.mxu3 }
 0x266   : > { %v884_v8 = vadd.f32 %v883_v6, %v798_v5  ;;  %v908_v14 = vsel %vm900_vm7, %v896_v7, %v904_v11  ;;  %v2262_v5 = vld [vmem:[%s2821_s8 + $0x8] sm:$0xff]  ;;  %v2267_v6 = vld [vmem:[%s2821_s8 + $0x34] sm:$0xff]  ;;  %v2272_v7 = vld [vmem:[%s2821_s8 + $0x60] sm:$0xff] }
 0x267   : > { %v2273_v11 = vld [vmem:[%s2821_s8 + $0x68] sm:$0xff] }
 0x268   : > { %v889_v10 = vadd.f32 %v884_v8, %v844_v9  ;;  %v2277_v8 = vld [vmem:[%s2821_s8 + $0x8c] sm:$0xff] }
 0x269   : > { %v2263_v9 = vld [vmem:[%s2821_s8 + $0x10] sm:$0xff] }
 0x26a   : > { %v897_v12 = vadd.f32 %v2304_v52, %v889_v10  ;;  %v2268_v10 = vld [vmem:[%s2821_s8 + $0x3c] sm:$0xff] }
 0x26c   : > { %vm901_vm8 = vcmp.gt.f32.partialorder %v897_v12, 0.0  ;;  %v905_v13 = vmul.f32 0.01, %v897_v12 }
 0x26e   : > { %v909_v15 = vsel %vm901_vm8, %v897_v12, %v905_v13  ;;  %v2278_v12 = vld [vmem:[%s2821_s8 + $0x94] sm:$0xff] }
 0x26f   : > { %v911_v16 = vpack.c.bf16 %v909_v15, %v908_v14  ;;  %v2264_v13 = vld [vmem:[%s2821_s8 + $0x18] sm:$0xff]  ;;  %v2269_v14 = vld [vmem:[%s2821_s8 + $0x44] sm:$0xff]  ;;  %v2274_v15 = vld [vmem:[%s2821_s8 + $0x70] sm:$0xff] }
 0x271   : > { %1117 = vmatmul.bf16.gmra.mxu1 %v911_v16  ;;  %1136 = vmatmul.bf16.gmra.mxu0 %v911_v16 }
 0x272   : > { %1155 = vmatmul.bf16.gmra.mxu2 %v911_v16  ;;  %1174 = vmatmul.bf16.gmra.mxu3 %v911_v16  ;;  %v2279_v16 = vld [vmem:[%s2821_s8 + $0x9c] sm:$0xff] }
 0x2de   : > { %v1113_v17 = vpop.f32.mrf.mxu1  ;;  %v1132_v18 = vpop.f32.mrf.mxu0 }
 0x2df   : > { %v1180_v34 = vpack.c.bf16 %v1132_v18, %v1113_v17  ;;  %v2265_v17 = vld [vmem:[%s2821_s8 + $0x20] sm:$0xff]  ;;  %v2270_v18 = vld [vmem:[%s2821_s8 + $0x4c] sm:$0xff] }
 0x2e1   : > { %v1243_v44 = vunpack.c.h.b16 %v1180_v34  ;;  %v1456_v45 = vunpack.c.l.b16 %v1180_v34 }
 0x2e5   : > { %v1151_v19 = vpop.f32.mrf.mxu2  ;;  %v1170_v20 = vpop.f32.mrf.mxu3 }
 0x2e6   : > { %v1115_v21 = vpop.f32.mrf.mxu1  ;;  %v1134_v22 = vpop.f32.mrf.mxu0  ;;  %v1181_v50 = vpack.c.bf16 %v1170_v20, %v1151_v19  ;;  %v2275_v19 = vld [vmem:[%s2821_s8 + $0x78] sm:$0xff]  ;;  %v2280_v20 = vld [vmem:[%s2821_s8 + $0xa4] sm:$0xff] }
 0x2e7   : > { %v1182_v32 = vpack.c.bf16 %v1134_v22, %v1115_v21  ;;  %v1198_v21 = vld [vmem:[%s2821_s8 + $0x28] sm:$0xf]  ;;  %v2064_v22 = vld [vmem:[%s2821_s8 + $0x54] sm:$0xf] }
 0x2e8   : > { %v1364_v63 = vunpack.c.h.b16 %v1181_v50  ;;  %v1548_v0 = vunpack.c.l.b16 %v1181_v50 }
 0x2e9   : > { %v1244_v39 = vunpack.c.h.b16 %v1182_v32  ;;  %v1457_v40 = vunpack.c.l.b16 %v1182_v32 }
 0x2eb   : > { %v1247_v51 = vpack.c.b16 %v1244_v39, %v1243_v44  ;;  %v1460_v52 = vpack.c.b16 %v1457_v40, %v1456_v45  ;;  %v2780_v40 = vld [vmem:[%s2822_s9] ss:$0 sm:$0xff] }
 0x2ed   : > { %v1153_v23 = vpop.f32.mrf.mxu2  ;;  %v1172_v24 = vpop.f32.mrf.mxu3 }
 0x2ee   : > { %v1118_v25 = vpop.f32.mrf.mxu1  ;;  %v1137_v26 = vpop.f32.mrf.mxu0  ;;  %v1183_v48 = vpack.c.bf16 %v1172_v24, %v1153_v23  ;;  %v1449_v23 = vunpack.c.l.b16 %v1198_v21  ;;  %v1232_v24 = vunpack.c.l.b16 %v2064_v22 }
 0x2ef   : > { %v1184_v27 = vpack.c.bf16 %v1137_v26, %v1118_v25  ;;  %v2101_v25 = vld [vmem:[%s2821_s8 + $0x80] sm:$0xf]  ;;  %v2112_v26 = vld [vmem:[%s2821_s8 + $0xac] sm:$0xf] }
 0x2f0   : > { %v1365_v59 = vunpack.c.h.b16 %v1183_v48  ;;  %v1549_v60 = vunpack.c.l.b16 %v1183_v48 }
 0x2f1   : > { %v1245_v35 = vunpack.c.h.b16 %v1184_v27  ;;  %v1458_v36 = vunpack.c.l.b16 %v1184_v27  ;;  %v1455_v27 = vpack.c.b16 %v1449_v23, %v1449_v23 }
 0x2f2   : > { %v1368_v1 = vpack.c.b16 %v1365_v59, %v1364_v63  ;;  %v1552_v2 = vpack.c.b16 %v1549_v60, %v1548_v0 }
 0x2f5   : > { %v1156_v28 = vpop.f32.mrf.mxu2  ;;  %v1175_v29 = vpop.f32.mrf.mxu3 }
 0x2f6   : > { %v1120_v30 = vpop.f32.mrf.mxu1  ;;  %v1139_v31 = vpop.f32.mrf.mxu0  ;;  %v1185_v43 = vpack.c.bf16 %v1175_v29, %v1156_v28  ;;  %v1238_v28 = vpack.c.b16 %v1232_v24, %v1232_v24  ;;  %v1541_v29 = vunpack.c.l.b16 %v2101_v25 }
 0x2f7   : > { %v1186_v33 = vpack.c.bf16 %v1139_v31, %v1120_v30  ;;  %v1353_v30 = vunpack.c.l.b16 %v2112_v26 }
 0x2f8   : > { %v1366_v53 = vunpack.c.h.b16 %v1185_v43  ;;  %v1550_v54 = vunpack.c.l.b16 %v1185_v43  ;;  %v1547_v31 = vpack.c.b16 %v1541_v29, %v1541_v29 }
 0x2f9   : > { %v1246_v37 = vunpack.c.h.b16 %v1186_v33  ;;  %v1459_v38 = vunpack.c.l.b16 %v1186_v33  ;;  %v1359_v32 = vpack.c.b16 %v1353_v30, %v1353_v30 }
 0x2fb   : > { %v1248_v41 = vpack.c.b16 %v1246_v37, %v1245_v35  ;;  %v1461_v42 = vpack.c.b16 %v1459_v38, %v1458_v36 }
 0x2fd   : > { %v1158_v46 = vpop.f32.mrf.mxu2  ;;  %v1177_v47 = vpop.f32.mrf.mxu3  ;;  %1276 = vmatpush.bf16.msra.mxu1 %v1248_v41  ;;  %1488 = vmatpush.bf16.msra.mxu2 %v1461_v42 }
 0x2fe   : > { %v1187_v49 = vpack.c.bf16 %v1177_v47, %v1158_v46 }
 0x300   : > { %v1367_v55 = vunpack.c.h.b16 %v1187_v49  ;;  %v1551_v56 = vunpack.c.l.b16 %v1187_v49 }
 0x301   : > { %1277 = vmatpush.bf16.msra.mxu1 %v1247_v51  ;;  %1489 = vmatpush.bf16.msra.mxu2 %v1460_v52 }
 0x302   : > { %v1369_v61 = vpack.c.b16 %v1367_v55, %v1366_v53  ;;  %v1553_v62 = vpack.c.b16 %v1551_v56, %v1550_v54 }
 0x304   : > { %1396 = vmatpush.bf16.msra.mxu0 %v1369_v61  ;;  %1580 = vmatpush.bf16.msra.mxu3 %v1553_v62 }
 0x305   : > { %2159 = vmatmul.msk.bf16.vlgmr.msra.gmra.mxu2 %vm1251_vm9, %v2261_v57  ;;  %2085 = vmatmul.msk.bf16.vlgmr.msra.gmra.mxu1 %vm1251_vm9, %v2266_v58 }
 0x308   : > { %1397 = vmatpush.bf16.msra.mxu0 %v1368_v1  ;;  %1581 = vmatpush.bf16.msra.mxu3 %v1552_v2 }
 0x30b   : > { %2185 = vmatmul.msk.bf16.vlgmr.msra.gmra.mxu3 %vm1251_vm9, %v2271_v3  ;;  %2133 = vmatmul.msk.bf16.vlgmr.msra.gmra.mxu0 %vm1251_vm9, %v2276_v4 }
 0x315   : > { %2160 = vmatmul.msk.bf16.gmra.mxu2 %vm1251_vm9, %v2262_v5  ;;  %2086 = vmatmul.msk.bf16.gmra.mxu1 %vm1251_vm9, %v2267_v6 }
 0x31b   : > { %2186 = vmatmul.msk.bf16.gmra.mxu3 %vm1251_vm9, %v2272_v7  ;;  %2134 = vmatmul.msk.bf16.gmra.mxu0 %vm1251_vm9, %v2277_v8 }
 0x325   : > { %2161 = vmatmul.msk.bf16.gmra.mxu2 %vm1251_vm9, %v2263_v9  ;;  %2087 = vmatmul.msk.bf16.gmra.mxu1 %vm1251_vm9, %v2268_v10 }
 0x32b   : > { %2187 = vmatmul.msk.bf16.gmra.mxu3 %vm1251_vm9, %v2273_v11  ;;  %2135 = vmatmul.msk.bf16.gmra.mxu0 %vm1251_vm9, %v2278_v12 }
 0x335   : > { %2162 = vmatmul.msk.bf16.gmra.mxu2 %vm1251_vm9, %v2264_v13  ;;  %2088 = vmatmul.msk.bf16.gmra.mxu1 %vm1251_vm9, %v2269_v14 }
 0x33b   : > { %2188 = vmatmul.msk.bf16.gmra.mxu3 %vm1251_vm9, %v2274_v15  ;;  %2136 = vmatmul.msk.bf16.gmra.mxu0 %vm1251_vm9, %v2279_v16 }
 0x345   : > { %2163 = vmatmul.msk.bf16.gmra.mxu2 %vm1251_vm9, %v2265_v17  ;;  %2089 = vmatmul.msk.bf16.gmra.mxu1 %vm1251_vm9, %v2270_v18 }
 0x34b   : > { %2189 = vmatmul.msk.bf16.gmra.mxu3 %vm1251_vm9, %v2275_v19  ;;  %2137 = vmatmul.msk.bf16.gmra.mxu0 %vm1251_vm9, %v2280_v20 }
 0x355   : > { %2164 = vmatmul.msk.bf16.gmra.mxu2 %vm1251_vm9, %v1455_v27  ;;  %2090 = vmatmul.msk.bf16.gmra.mxu1 %vm1251_vm9, %v1238_v28 }
 0x35b   : > { %2190 = vmatmul.msk.bf16.gmra.mxu3 %vm1251_vm9, %v1547_v31  ;;  %2138 = vmatmul.msk.bf16.gmra.mxu0 %vm1251_vm9, %v1359_v32 }
 0x382   : > { %v1279_v33 = vpop.f32.mrf.mxu1 }
 0x388   : > { %v1399_v34 = vpop.f32.mrf.mxu0  ;;  %v1491_v35 = vpop.f32.mrf.mxu2 }
 0x389   : > { %v1492_v37 = vadd.f32 %v1491_v35, %v1279_v33 }
 0x38a   : > { %v1281_v36 = vpop.f32.mrf.mxu1 }
 0x38e   : > { %v1583_v38 = vpop.f32.mrf.mxu3 }
 0x38f   : > { %v1584_v39 = vadd.f32 %v1583_v38, %v1399_v34 }
 0x390   : > { %v1401_v41 = vpop.f32.mrf.mxu0  ;;  %v1493_v42 = vpop.f32.mrf.mxu2 }
 0x391   : > { %v1612_v43 = vadd.f32 %v1584_v39, %v1492_v37  ;;  %v1494_v49 = vadd.f32 %v1493_v42, %v1281_v36 }
 0x392   : > { %v1284_v44 = vpop.f32.mrf.mxu1 }
 0x393   : > { %v1627_v45 = vadd.f32 %v2780_v40, %v1612_v43 }
 0x395   : > { %vm1638_vm10 = vcmp.gt.f32.partialorder %v1627_v45, 0.0  ;;  %v1649_v46 = vmul.f32 0.01, %v1627_v45 }
 0x396   : > { %v1585_v47 = vpop.f32.mrf.mxu3 }
 0x397   : > { %v1660_v48 = vsel %vm1638_vm10, %v1627_v45, %v1649_v46  ;;  %v1586_v50 = vadd.f32 %v1585_v47, %v1401_v41 }
 0x398   : > { %1671 = vst [vmem:[%s2787_s25] sm:$0xff] %v1660_v48  ;;  %v1404_v51 = vpop.f32.mrf.mxu0  ;;  %v1496_v52 = vpop.f32.mrf.mxu2 }
 0x399   : > { %v1613_v53 = vadd.f32 %v1586_v50, %v1494_v49  ;;  %v1497_v57 = vadd.f32 %v1496_v52, %v1284_v44 }
 0x39a   : > { %v1286_v54 = vpop.f32.mrf.mxu1 }
 0x39b   : > { %v1628_v55 = vadd.f32 %v2780_v40, %v1613_v53 }
 0x39d   : > { %vm1639_vm11 = vcmp.gt.f32.partialorder %v1628_v55, 0.0  ;;  %v1650_v56 = vmul.f32 0.01, %v1628_v55 }
 0x39e   : > { %v1588_v58 = vpop.f32.mrf.mxu3 }
 0x39f   : > { %v1661_v59 = vsel %vm1639_vm11, %v1628_v55, %v1650_v56  ;;  %v1589_v60 = vadd.f32 %v1588_v58, %v1404_v51 }
 0x3a0   : > { %1672 = vst [vmem:[%s2787_s25 + $0x8] sm:$0xff] %v1661_v59  ;;  %v1406_v61 = vpop.f32.mrf.mxu0  ;;  %v1498_v62 = vpop.f32.mrf.mxu2 }
 0x3a1   : > { %v1614_v63 = vadd.f32 %v1589_v60, %v1497_v57  ;;  %v1499_v5 = vadd.f32 %v1498_v62, %v1286_v54 }
 0x3a2   : > { %v1289_v0 = vpop.f32.mrf.mxu1 }
 0x3a3   : > { %v1629_v1 = vadd.f32 %v2780_v40, %v1614_v63 }
 0x3a5   : > { %vm1640_vm12 = vcmp.gt.f32.partialorder %v1629_v1, 0.0  ;;  %v1651_v2 = vmul.f32 0.01, %v1629_v1 }
 0x3a6   : > { %v1590_v3 = vpop.f32.mrf.mxu3 }
 0x3a7   : > { %v1662_v4 = vsel %vm1640_vm12, %v1629_v1, %v1651_v2  ;;  %v1591_v6 = vadd.f32 %v1590_v3, %v1406_v61 }
 0x3a8   : > { %1673 = vst [vmem:[%s2787_s25 + $0x10] sm:$0xff] %v1662_v4  ;;  %v1409_v7 = vpop.f32.mrf.mxu0  ;;  %v1501_v8 = vpop.f32.mrf.mxu2 }
 0x3a9   : > { %v1615_v9 = vadd.f32 %v1591_v6, %v1499_v5  ;;  %v1502_v13 = vadd.f32 %v1501_v8, %v1289_v0 }
 0x3aa   : > { %v1291_v10 = vpop.f32.mrf.mxu1 }
 0x3ab   : > { %v1630_v11 = vadd.f32 %v2780_v40, %v1615_v9 }
 0x3ad   : > { %vm1641_vm13 = vcmp.gt.f32.partialorder %v1630_v11, 0.0  ;;  %v1652_v12 = vmul.f32 0.01, %v1630_v11 }
 0x3ae   : > { %v1593_v14 = vpop.f32.mrf.mxu3 }
 0x3af   : > { %v1663_v15 = vsel %vm1641_vm13, %v1630_v11, %v1652_v12  ;;  %v1594_v16 = vadd.f32 %v1593_v14, %v1409_v7 }
 0x3b0   : > { %1674 = vst [vmem:[%s2787_s25 + $0x18] sm:$0xff] %v1663_v15  ;;  %v1411_v17 = vpop.f32.mrf.mxu0  ;;  %v1503_v18 = vpop.f32.mrf.mxu2 }
 0x3b1   : > { %v1616_v19 = vadd.f32 %v1594_v16, %v1502_v13  ;;  %v1504_v25 = vadd.f32 %v1503_v18, %v1291_v10 }
 0x3b2   : > { %v1294_v20 = vpop.f32.mrf.mxu1 }
 0x3b3   : > { %v1631_v21 = vadd.f32 %v2780_v40, %v1616_v19 }
 0x3b5   : > { %vm1642_vm14 = vcmp.gt.f32.partialorder %v1631_v21, 0.0  ;;  %v1653_v22 = vmul.f32 0.01, %v1631_v21 }
 0x3b6   : > { %v1595_v23 = vpop.f32.mrf.mxu3 }
 0x3b7   : > { %v1664_v24 = vsel %vm1642_vm14, %v1631_v21, %v1653_v22  ;;  %v1596_v26 = vadd.f32 %v1595_v23, %v1411_v17 }
 0x3b8   : > { %1675 = vst [vmem:[%s2787_s25 + $0x20] sm:$0xff] %v1664_v24  ;;  %v1414_v27 = vpop.f32.mrf.mxu0  ;;  %v1506_v28 = vpop.f32.mrf.mxu2 }
 0x3b9   : > { %v1617_v29 = vadd.f32 %v1596_v26, %v1504_v25  ;;  %v1507_v33 = vadd.f32 %v1506_v28, %v1294_v20 }
 0x3ba   : > { %v1296_v30 = vpop.f32.mrf.mxu1 }
 0x3bb   : > { %v1632_v31 = vadd.f32 %v2780_v40, %v1617_v29 }
 0x3bd   : > { %vm1643_vm15 = vcmp.gt.f32.partialorder %v1632_v31, 0.0  ;;  %v1654_v32 = vmul.f32 0.01, %v1632_v31 }
 0x3be   : > { %v1598_v34 = vpop.f32.mrf.mxu3 }
 0x3bf   : > { %v1665_v35 = vsel %vm1643_vm15, %v1632_v31, %v1654_v32  ;;  %v1599_v36 = vadd.f32 %v1598_v34, %v1414_v27 }
 0x3c0   : > { %1676 = vst [vmem:[%s2787_s25 + $0x28] sm:$0xff] %v1665_v35  ;;  %v1416_v37 = vpop.f32.mrf.mxu0  ;;  %v1508_v38 = vpop.f32.mrf.mxu2 }
 0x3c1   : > { %v1618_v39 = vadd.f32 %v1599_v36, %v1507_v33  ;;  %v1509_v46 = vadd.f32 %v1508_v38, %v1296_v30 }
 0x3c2   : > { %v1299_v41 = vpop.f32.mrf.mxu1 }
 0x3c3   : > { %v1633_v42 = vadd.f32 %v2780_v40, %v1618_v39 }
 0x3c5   : > { %vm1644_vm0 = vcmp.gt.f32.partialorder %v1633_v42, 0.0  ;;  %v1655_v43 = vmul.f32 0.01, %v1633_v42 }
 0x3c6   : > { %v1600_v44 = vpop.f32.mrf.mxu3 }
 0x3c7   : > { %v1666_v45 = vsel %vm1644_vm0, %v1633_v42, %v1655_v43  ;;  %v1601_v47 = vadd.f32 %v1600_v44, %v1416_v37 }
 0x3c8   : > { %1677 = vst [vmem:[%s2787_s25 + $0x30] sm:$0xff] %v1666_v45  ;;  %v1419_v48 = vpop.f32.mrf.mxu0  ;;  %v1511_v49 = vpop.f32.mrf.mxu2 }
 0x3c9   : > { %v1619_v50 = vadd.f32 %v1601_v47, %v1509_v46  ;;  %v1512_v54 = vadd.f32 %v1511_v49, %v1299_v41 }
 0x3ca   : > { %v1301_v51 = vpop.f32.mrf.mxu1 }
 0x3cb   : > { %v1634_v52 = vadd.f32 %v2780_v40, %v1619_v50 }
 0x3cd   : > { %vm1645_vm1 = vcmp.gt.f32.partialorder %v1634_v52, 0.0  ;;  %v1656_v53 = vmul.f32 0.01, %v1634_v52 }
 0x3ce   : > { %v1603_v55 = vpop.f32.mrf.mxu3 }
 0x3cf   : > { %v1667_v56 = vsel %vm1645_vm1, %v1634_v52, %v1656_v53  ;;  %v1604_v57 = vadd.f32 %v1603_v55, %v1419_v48 }
 0x3d0   : > { %1678 = vst [vmem:[%s2787_s25 + $0x38] sm:$0xff] %v1667_v56  ;;  %v1421_v58 = vpop.f32.mrf.mxu0  ;;  %v1513_v59 = vpop.f32.mrf.mxu2 }
 0x3d1   : > { %v1620_v60 = vadd.f32 %v1604_v57, %v1512_v54  ;;  %v1514_v2 = vadd.f32 %v1513_v59, %v1301_v51 }
 0x3d2   : > { %v1304_v61 = vpop.f32.mrf.mxu1 }
 0x3d3   : > { %v1635_v62 = vadd.f32 %v2780_v40, %v1620_v60 }
 0x3d5   : > { %vm1646_vm2 = vcmp.gt.f32.partialorder %v1635_v62, 0.0  ;;  %v1657_v63 = vmul.f32 0.01, %v1635_v62 }
 0x3d6   : > { %v1605_v0 = vpop.f32.mrf.mxu3 }
 0x3d7   : > { %v1668_v1 = vsel %vm1646_vm2, %v1635_v62, %v1657_v63  ;;  %v1606_v3 = vadd.f32 %v1605_v0, %v1421_v58 }
 0x3d8   : > { %1679 = vst [vmem:[%s2787_s25 + $0x40] sm:$0xff] %v1668_v1  ;;  %v1424_v4 = vpop.f32.mrf.mxu0  ;;  %v1516_v5 = vpop.f32.mrf.mxu2 }
 0x3d9   : > { %v1621_v6 = vadd.f32 %v1606_v3, %v1514_v2  ;;  %v1517_v10 = vadd.f32 %v1516_v5, %v1304_v61 }
 0x3da   : > { %v1306_v7 = vpop.f32.mrf.mxu1 }
 0x3db   : > { %v1636_v8 = vadd.f32 %v2780_v40, %v1621_v6 }
 0x3dd   : > { %vm1647_vm3 = vcmp.gt.f32.partialorder %v1636_v8, 0.0  ;;  %v1658_v9 = vmul.f32 0.01, %v1636_v8 }
 0x3de   : > { %v1608_v11 = vpop.f32.mrf.mxu3 }
 0x3df   : > { %v1669_v12 = vsel %vm1647_vm3, %v1636_v8, %v1658_v9  ;;  %v1609_v13 = vadd.f32 %v1608_v11, %v1424_v4 }
 0x3e0   : > { %1680 = vst [vmem:[%s2787_s25 + $0x48] sm:$0xff] %v1669_v12  ;;  %v1426_v14 = vpop.f32.mrf.mxu0  ;;  %v1518_v15 = vpop.f32.mrf.mxu2 }
 0x3e1   : > { %v1622_v16 = vadd.f32 %v1609_v13, %v1517_v10 }
 0x3e3   : > { %v1637_v17 = vadd.f32 %v2780_v40, %v1622_v16 }
 0x3e5   : > { %vm1648_vm4 = vcmp.gt.f32.partialorder %v1637_v17, 0.0  ;;  %v1659_v18 = vmul.f32 0.01, %v1637_v17 }
 0x3e6   : > { %v1610_v19 = vpop.f32.mrf.mxu3 }
 0x3e7   : > { %v1670_v20 = vsel %vm1648_vm4, %v1637_v17, %v1659_v18 }
 0x3e8   : > { %1681 = vst [vmem:[%s2787_s25 + $0x50] sm:$0xff] %v1670_v20 }
 0x3e9 PF: > { %s21_s13 = sadd.s32 1, %s2346_s13  }
 0x3ea   : > { %p18_p7 = scmp.ge.s32.totalorder %s21_s13, 4  }
 0x3ec   :  { %20 = sbr.rel (!%p18_p7) target bundleno = 1 (0x1), region = 102 }
 0x3f1   :  { %1703 = vsyncpa [#allocation3], 1 }
 0x3f2   :  { %1705 = vsyncpa [#allocation3 + $0x1], 1 }

</bundles_post_ra>
